<compile_context>
chip_gen: v5e
topology: v5e:2x2
jax: 0.10.0
libtpu: 0.0.40
codegen_flags: <defaults>
</compile_context>

<pallas_src>
import jax
import jax.numpy as jnp
from jax.experimental import pallas as pl
from jax.experimental.pallas import tpu as pltpu


# ---------------------------------------------------------------------------
# Kernel
# ---------------------------------------------------------------------------

def _zeroshot_clip_kernel(scale_ref, x_ref, w_ref, t_ref,
                          featn_ref, logits_ref, acc_ref):
    # TODO(synk): the full CLIP ViT/ResNet image encoder is not reproduced here; it is
    # replaced by a deterministic linear projection of the flattened image (the matmul
    # hot path), which preserves the output shape (B, D).
    k = pl.program_id(1)

    @pl.when(k == 0)
    def _():
        acc_ref[...] = jnp.zeros_like(acc_ref)

    # Projection partial product: (tm, tk) @ (tk, D_pad) accumulated in f32 on the MXU.
    acc_ref[...] += jnp.dot(x_ref[...], w_ref[...],
                            preferred_element_type=jnp.float32)

    @pl.when(k == pl.num_programs(1) - 1)
    def _():
        feat = acc_ref[...]                                     # (tm, D_pad) f32
        # image_features / image_features.norm(dim=-1, keepdim=True)
        norm_sq = jnp.sum(feat * feat, axis=-1, keepdims=True)
        # rsqrt -> EUP; the max() only guards all-zero padding rows (torch would give NaN
        # there, but those rows are sliced away in the wrapper).
        inv_norm = jax.lax.rsqrt(jnp.maximum(norm_sq, 1e-30))
        featn_bf = (feat * inv_norm).astype(featn_ref.dtype)    # one bf16 cast: store + MXU
        featn_ref[...] = featn_bf

        # One lane-dense matmul against the fused (D_pad, NC+NF padded) text matrix; the
        # exp(logit_scale) is applied to the f32 logits AFTER the dot (no bf16 quantization
        # of scale*features, and only a (tm, N_pad) VPU multiply).
        logits = jnp.dot(featn_bf, t_ref[...], preferred_element_type=jnp.float32)
        logits_ref[...] = (jnp.exp(scale_ref[0]) * logits).astype(logits_ref.dtype)


# ---------------------------------------------------------------------------
# Wrapper (weight-side preprocessing hoisted to init)
# ---------------------------------------------------------------------------

def _round_up(x, m):
    return (x + m - 1) // m * m


def _vmem_limit_bytes():
    """~7/8 of the chip's VMEM: ~112 MiB on v5e/v6e, ~56 MiB on v7x."""
    try:
        cap = int(pltpu.get_tpu_info().vmem_capacity_bytes)
    except Exception:
        cap = 64 * 1024 * 1024          # conservative fallback (v7x per-core VMEM)
    return cap * 7 // 8


def make_zeroshot_clip_forward(w_proj, text_coarse, text_fine, logit_scale,
                               *, tm=256, tk=2048):
    """Build a jitted forward(images); all weight/text padding+casting happens once here."""
    k_dim, d = w_proj.shape
    nc, nf = text_coarse.shape[0], text_fine.shape[0]
    n = nc + nf

    k128 = _round_up(k_dim, 128)
    tk = min(tk, k128)
    k_pad = _round_up(k128, tk)
    d_pad = _round_up(d, 128)
    n_pad = _round_up(n, 128)

    # --- one-time, lane-padded bf16 operands (out of the per-call path) ---
    w_p = jnp.zeros((k_pad, d_pad), jnp.bfloat16).at[:k_dim, :d].set(
        w_proj.astype(jnp.bfloat16))
    text_cat = jnp.concatenate([text_coarse, text_fine], axis=0)          # (N, D)
    t_p = jnp.zeros((d_pad, n_pad), jnp.bfloat16).at[:d, :n].set(
        text_cat.T.astype(jnp.bfloat16))                                  # pre-transposed (D, N)
    scale_p = jnp.asarray(logit_scale, jnp.float32).reshape((1,))

    vmem_limit = _vmem_limit_bytes()

    def _build(single_buffer_text):
        if single_buffer_text:
            # Grid-invariant text block: one buffer is enough, the second is pure waste.
            text_spec = pl.BlockSpec((d_pad, n_pad), lambda i, k, s: (0, 0),
                                     pipeline_mode=pl.Buffered(1))
        else:
            text_spec = pl.BlockSpec((d_pad, n_pad), lambda i, k, s: (0, 0))

        @jax.jit
        def _forward(images, w_p, t_p, scale_p):
            b = images.shape[0]
            x = images.reshape(b, -1)                  # (B, C*H*W), row-major like PyTorch
            assert x.shape[1] == k_dim

            # Small batches: pad M only to the bf16 sublane pack (16) and use a single M
            # tile; large batches: pad to a multiple of tm.
            m16 = _round_up(max(b, 1), 16)
            tm_eff = m16 if m16 <= tm else tm
            m_pad = m16 if m16 <= tm else _round_up(b, tm)
            # TODO(synk): when m_pad // tm_eff == 1 on v7x the second TensorCore idles; a
            # K-split reduction across cores would recover it for tiny batches.

            x_p = jnp.zeros((m_pad, k_pad), jnp.bfloat16).at[:b, :k_dim].set(
                x.astype(jnp.bfloat16))

            grid = (m_pad // tm_eff, k_pad // tk)

            featn_p, logits_p = pl.pallas_call(
                _zeroshot_clip_kernel,
                out_shape=(jax.ShapeDtypeStruct((m_pad, d_pad), jnp.bfloat16),
                           jax.ShapeDtypeStruct((m_pad, n_pad), jnp.float32)),
                grid_spec=pltpu.PrefetchScalarGridSpec(
                    num_scalar_prefetch=1,                                  # logit_scale -> SMEM
                    grid=grid,
                    in_specs=[
                        pl.BlockSpec((tm_eff, tk), lambda i, k, s: (i, k)),   # x tile
                        pl.BlockSpec((tk, d_pad), lambda i, k, s: (k, 0)),    # w_proj tile
                        text_spec,                                            # fused text (resident)
                    ],
                    out_specs=(
                        pl.BlockSpec((tm_eff, d_pad), lambda i, k, s: (i, 0)),  # image_features
                        pl.BlockSpec((tm_eff, n_pad), lambda i, k, s: (i, 0)),  # fused logits
                    ),
                    scratch_shapes=[pltpu.VMEM((tm_eff, d_pad), jnp.float32)],  # f32 accumulator
                ),
                compiler_params=pltpu.CompilerParams(
                    dimension_semantics=("parallel", "arbitrary"),
                    vmem_limit_bytes=vmem_limit,
                ),
            )(scale_p, x_p, w_p, t_p)

            image_features = featn_p[:b, :d]
            logits = logits_p[:b, :n]
            return logits[:, :nc], logits[:, nc:], image_features

        return _forward

    # Prefer the single-buffered text block; fall back if this JAX build rejects it.
    impls = []
    try:
        impls.append(_build(True))
    except TypeError:
        pass
    impls.append(_build(False))

    state = {"impl": None}

    def forward(images):
        if state["impl"] is not None:
            return state["impl"](images, w_p, t_p, scale_p)
        last_err = None
        for cand in impls:
            try:
                out = cand(images, w_p, t_p, scale_p)
                state["impl"] = cand
                return out
            except Exception as e:      # e.g. Buffered(1) rejected at lowering time
                last_err = e
        raise last_err

    return forward


def _l2_normalize(x, axis=-1):
    return x / jnp.linalg.norm(x, axis=axis, keepdims=True)


# ---------------------------------------------------------------------------
# Main
# ---------------------------------------------------------------------------

if __name__ == "__main__":
    key = jax.random.PRNGKey(0)
    k_img, k_proj, k_tc, k_tf = jax.random.split(key, 4)

    # Small shapes consistent with the forward pass.
    B, C, H, W = 2, 3, 16, 16        # images (NCHW)
    D = 32                           # CLIP embedding dim (synthetic)
    N_COARSE, N_FINE = 4, 16         # number of coarse / fine class prompts
    N_TEMPLATES = 3                  # number of text templates (averaged)

    images = jax.random.normal(k_img, (B, C, H, W), dtype=jnp.float32)

    # Deterministic stand-in "image encoder" projection weights.
    w_proj = 0.02 * jax.random.normal(k_proj, (C * H * W, D), dtype=jnp.float32)

    # Synthetic text features mirroring __init__: per-template encode -> normalize
    # -> mean over templates -> normalize again.  (Parameter setup, plain JAX.)
    tc_raw = jax.random.normal(k_tc, (N_COARSE, N_TEMPLATES, D), dtype=jnp.float32)
    tf_raw = jax.random.normal(k_tf, (N_FINE, N_TEMPLATES, D), dtype=jnp.float32)
    text_coarse = _l2_normalize(_l2_normalize(tc_raw).mean(axis=1))
    text_fine = _l2_normalize(_l2_normalize(tf_raw).mean(axis=1))

    # CLIP's learned logit scale parameter: log(1 / 0.07).
    logit_scale = jnp.array([jnp.log(1.0 / 0.07)], dtype=jnp.float32)

    # Build once (weight-side padding hoisted out of the per-call path), then run.
    forward = make_zeroshot_clip_forward(w_proj, text_coarse, text_fine, logit_scale)
    logits_coarse, logits_fine, image_features = jax.block_until_ready(forward(images))

    # Pure-JAX reference mirroring the kernel's numerics (bf16 operands, f32 accumulate,
    # rsqrt normalization, scale applied to the f32 logits) so tolerances stay tight.
    x_f = images.reshape(B, -1).astype(jnp.bfloat16).astype(jnp.float32)
    w_f = w_proj.astype(jnp.bfloat16).astype(jnp.float32)
    feat_ref = x_f @ w_f
    inv_norm_ref = jax.lax.rsqrt(jnp.sum(feat_ref * feat_ref, axis=-1, keepdims=True))
    featn_bf_ref = (feat_ref * inv_norm_ref).astype(jnp.bfloat16)
    text_cat_f = jnp.concatenate([text_coarse, text_fine], axis=0
                                 ).astype(jnp.bfloat16).astype(jnp.float32)
    logits_ref = jnp.exp(logit_scale[0]) * (featn_bf_ref.astype(jnp.float32) @ text_cat_f.T)
    ref_c = logits_ref[:, :N_COARSE]
    ref_f = logits_ref[:, N_COARSE:]

    assert logits_coarse.shape == (B, N_COARSE)
    assert logits_fine.shape == (B, N_FINE)
    assert image_features.shape == (B, D)
    assert jnp.allclose(logits_coarse, ref_c, atol=2e-2, rtol=2e-2)
    assert jnp.allclose(logits_fine, ref_f, atol=2e-2, rtol=2e-2)
    assert jnp.allclose(image_features.astype(jnp.float32),
                        featn_bf_ref.astype(jnp.float32), atol=1e-2, rtol=1e-2)

    print("KERNEL_OK")
</pallas_src>

<mosaic_0001>
module attributes {stable_mosaic.version = 11 : i64} {
  func.func @_zeroshot_clip_kernel(%arg0: i32, %arg1: i32, %arg2: memref<1xf32, #tpu.memory_space<smem>>, %arg3: memref<16x768xbf16, #tpu.memory_space<vmem>>, %arg4: memref<768x128xbf16, #tpu.memory_space<vmem>>, %arg5: memref<128x128xbf16, #tpu.memory_space<vmem>>, %arg6: memref<16x128xbf16, #tpu.memory_space<vmem>>, %arg7: memref<16x128xf32, #tpu.memory_space<vmem>>, %arg8: memref<16x128xf32, #tpu.memory_space<vmem>>) attributes {dimension_semantics = [#tpu.dimension_semantics<parallel>, #tpu.dimension_semantics<arbitrary>], iteration_bounds = array<i64: 1, 1>, scalar_prefetch = 1 : i64, scratch_operands = 1 : i64, tpu.core_type = #tpu.core_type<tc>, window_params = [{transform_indices = @transform_0, window_bounds = array<i64: 16, 768>}, {transform_indices = @transform_1, window_bounds = array<i64: 768, 128>}, {pipeline_mode = #tpu.pipeline_mode<synchronous>, transform_indices = @transform_2, window_bounds = array<i64: 128, 128>}, {transform_indices = @transform_3, window_bounds = array<i64: 16, 128>}, {transform_indices = @transform_4, window_bounds = array<i64: 16, 128>}]} {
    %c0_i32 = arith.constant 0 : i32
    %0 = arith.cmpi eq, %arg1, %c0_i32 : i32
    %1 = arith.extui %0 : i1 to i32
    %c0_i32_0 = arith.constant 0 : i32
    %2 = arith.cmpi ne, %1, %c0_i32_0 : i32
    scf.if %2 {
      %cst_10 = arith.constant 0.000000e+00 : f32
      %12 = vector.broadcast %cst_10 : f32 to vector<16x128xf32>
      %c0_11 = arith.constant 0 : index
      %c0_12 = arith.constant 0 : index
      %13 = vector.load %arg8[%c0_11, %c0_12] : memref<16x128xf32, #tpu.memory_space<vmem>>, vector<16x128xf32>
      tpu.vector_store %arg8[%c0_11, %c0_12], %12 {strides = array<i32>} : memref<16x128xf32, #tpu.memory_space<vmem>>, vector<16x128xf32>,
    } else {
    }
    %c0 = arith.constant 0 : index
    %c0_1 = arith.constant 0 : index
    %3 = vector.load %arg8[%c0, %c0_1] : memref<16x128xf32, #tpu.memory_space<vmem>>, vector<16x128xf32>
    %c0_2 = arith.constant 0 : index
    %c0_3 = arith.constant 0 : index
    %4 = vector.load %arg3[%c0_2, %c0_3] : memref<16x768xbf16, #tpu.memory_space<vmem>>, vector<16x768xbf16>
    %c0_4 = arith.constant 0 : index
    %c0_5 = arith.constant 0 : index
    %5 = vector.load %arg4[%c0_4, %c0_5] : memref<768x128xbf16, #tpu.memory_space<vmem>>, vector<768x128xbf16>
    %cst = arith.constant dense<0.000000e+00> : vector<16x128xf32>
    %6 = tpu.matmul %4, %5, %cst {dimension_numbers = #tpu.dot_dimension_numbers<[1], [0], [0], [1], [0, 0, 1, 1], [], []>} : vector<16x768xbf16>, vector<768x128xbf16>, vector<16x128xf32> -> vector<16x128xf32>
    %7 = arith.addf %3, %6 : vector<16x128xf32>
    %c0_6 = arith.constant 0 : index
    %c0_7 = arith.constant 0 : index
    %8 = vector.load %arg8[%c0_6, %c0_7] : memref<16x128xf32, #tpu.memory_space<vmem>>, vector<16x128xf32>
    tpu.vector_store %arg8[%c0_6, %c0_7], %7 {strides = array<i32>} : memref<16x128xf32, #tpu.memory_space<vmem>>, vector<16x128xf32>,
    %c0_i32_8 = arith.constant 0 : i32
    %9 = arith.cmpi eq, %arg1, %c0_i32_8 : i32
    %10 = arith.extui %9 : i1 to i32
    %c0_i32_9 = arith.constant 0 : i32
    %11 = arith.cmpi ne, %10, %c0_i32_9 : i32
    scf.if %11 {
      %c0_10 = arith.constant 0 : index
      %c0_11 = arith.constant 0 : index
      %12 = vector.load %arg8[%c0_10, %c0_11] : memref<16x128xf32, #tpu.memory_space<vmem>>, vector<16x128xf32>
      %13 = arith.mulf %12, %12 : vector<16x128xf32>
      %cst_12 = arith.constant dense<0.000000e+00> : vector<16xf32>
      %14 = vector.multi_reduction <add>, %13, %cst_12 [1] : vector<16x128xf32> to vector<16xf32>
      %15 = vector.shape_cast %14 : vector<16xf32> to vector<16x1xf32>
      %cst_13 = arith.constant 1.000000e-30 : f32
      %16 = vector.broadcast %cst_13 : f32 to vector<16x1xf32>
      %17 = arith.maximumf %15, %16 : vector<16x1xf32>
      %18 = math.rsqrt %17 : vector<16x1xf32>
      %19 = vector.broadcast %18 : vector<16x1xf32> to vector<16x128xf32>
      %20 = arith.mulf %12, %19 : vector<16x128xf32>
      %21 = arith.truncf %20 : vector<16x128xf32> to vector<16x128xbf16>
      %c0_14 = arith.constant 0 : index
      %c0_15 = arith.constant 0 : index
      %22 = vector.load %arg6[%c0_14, %c0_15] : memref<16x128xbf16, #tpu.memory_space<vmem>>, vector<16x128xbf16>
      tpu.vector_store %arg6[%c0_14, %c0_15], %21 {strides = array<i32>} : memref<16x128xbf16, #tpu.memory_space<vmem>>, vector<16x128xbf16>,
      %c0_16 = arith.constant 0 : index
      %c0_17 = arith.constant 0 : index
      %23 = vector.load %arg5[%c0_16, %c0_17] : memref<128x128xbf16, #tpu.memory_space<vmem>>, vector<128x128xbf16>
      %cst_18 = arith.constant dense<0.000000e+00> : vector<16x128xf32>
      %24 = tpu.matmul %21, %23, %cst_18 {dimension_numbers = #tpu.dot_dimension_numbers<[1], [0], [0], [1], [0, 0, 1, 1], [], []>} : vector<16x128xbf16>, vector<128x128xbf16>, vector<16x128xf32> -> vector<16x128xf32>
      %c0_19 = arith.constant 0 : index
      %25 = memref.load %arg2[%c0_19] : memref<1xf32, #tpu.memory_space<smem>>
      %26 = math.exp %25 : f32
      %27 = vector.broadcast %26 : f32 to vector<16x128xf32>
      %28 = arith.mulf %27, %24 : vector<16x128xf32>
      %c0_20 = arith.constant 0 : index
      %c0_21 = arith.constant 0 : index
      %29 = vector.load %arg7[%c0_20, %c0_21] : memref<16x128xf32, #tpu.memory_space<vmem>>, vector<16x128xf32>
      tpu.vector_store %arg7[%c0_20, %c0_21], %28 {strides = array<i32>} : memref<16x128xf32, #tpu.memory_space<vmem>>, vector<16x128xf32>,
    } else {
    }
    return
  }
  func.func @transform_0(%arg0: i32, %arg1: i32, %arg2: memref<1xf32, #tpu.memory_space<smem>>) -> (i32, i32) {
    %c0_i32 = arith.constant 0 : i32
    return %arg0, %arg1 : i32, i32
  }
  func.func @transform_1(%arg0: i32, %arg1: i32, %arg2: memref<1xf32, #tpu.memory_space<smem>>) -> (i32, i32) {
    %c0_i32 = arith.constant 0 : i32
    %c0_i32_0 = arith.constant 0 : i32
    return %arg1, %c0_i32 : i32, i32
  }
  func.func @transform_2(%arg0: i32, %arg1: i32, %arg2: memref<1xf32, #tpu.memory_space<smem>>) -> (i32, i32) {
    %c0_i32 = arith.constant 0 : i32
    %c0_i32_0 = arith.constant 0 : i32
    %c0_i32_1 = arith.constant 0 : i32
    return %c0_i32, %c0_i32_0 : i32, i32
  }
  func.func @transform_3(%arg0: i32, %arg1: i32, %arg2: memref<1xf32, #tpu.memory_space<smem>>) -> (i32, i32) {
    %c0_i32 = arith.constant 0 : i32
    %c0_i32_0 = arith.constant 0 : i32
    return %arg0, %c0_i32 : i32, i32
  }
  func.func @transform_4(%arg0: i32, %arg1: i32, %arg2: memref<1xf32, #tpu.memory_space<smem>>) -> (i32, i32) {
    %c0_i32 = arith.constant 0 : i32
    %c0_i32_0 = arith.constant 0 : i32
    return %arg0, %c0_i32 : i32, i32
  }
}

module attributes {stable_mosaic.version = 11 : i64} {
  func.func @_zeroshot_clip_kernel(%arg0: i32, %arg1: i32, %arg2: memref<1xf32, #tpu.memory_space<smem>>, %arg3: memref<16x768xbf16, #tpu.memory_space<vmem>>, %arg4: memref<768x128xbf16, #tpu.memory_space<vmem>>, %arg5: memref<128x128xbf16, #tpu.memory_space<vmem>>, %arg6: memref<16x128xbf16, #tpu.memory_space<vmem>>, %arg7: memref<16x128xf32, #tpu.memory_space<vmem>>, %arg8: memref<16x128xf32, #tpu.memory_space<vmem>>) attributes {dimension_semantics = [#tpu.dimension_semantics<parallel>, #tpu.dimension_semantics<arbitrary>], iteration_bounds = array<i64: 1, 1>, scalar_prefetch = 1 : i64, scratch_operands = 1 : i64, tpu.core_type = #tpu.core_type<tc>, window_params = [{transform_indices = @transform_0, window_bounds = array<i64: 16, 768>}, {transform_indices = @transform_1, window_bounds = array<i64: 768, 128>}, {pipeline_mode = #tpu.pipeline_mode<synchronous>, transform_indices = @transform_2, window_bounds = array<i64: 128, 128>}, {transform_indices = @transform_3, window_bounds = array<i64: 16, 128>}, {transform_indices = @transform_4, window_bounds = array<i64: 16, 128>}]} {
    %c0_i32 = arith.constant 0 : i32
    %0 = arith.cmpi eq, %arg1, %c0_i32 : i32
    %1 = arith.extui %0 : i1 to i32
    %c0_i32_0 = arith.constant 0 : i32
    %2 = arith.cmpi ne, %1, %c0_i32_0 : i32
    scf.if %2 {
      %cst_10 = arith.constant 0.000000e+00 : f32
      %12 = vector.broadcast %cst_10 : f32 to vector<16x128xf32>
      %c0_11 = arith.constant 0 : index
      %c0_12 = arith.constant 0 : index
      %13 = vector.load %arg8[%c0_11, %c0_12] : memref<16x128xf32, #tpu.memory_space<vmem>>, vector<16x128xf32>
      tpu.vector_store %arg8[%c0_11, %c0_12], %12 {strides = array<i32>} : memref<16x128xf32, #tpu.memory_space<vmem>>, vector<16x128xf32>,
    } else {
    }
    %c0 = arith.constant 0 : index
    %c0_1 = arith.constant 0 : index
    %3 = vector.load %arg8[%c0, %c0_1] : memref<16x128xf32, #tpu.memory_space<vmem>>, vector<16x128xf32>
    %c0_2 = arith.constant 0 : index
    %c0_3 = arith.constant 0 : index
    %4 = vector.load %arg3[%c0_2, %c0_3] : memref<16x768xbf16, #tpu.memory_space<vmem>>, vector<16x768xbf16>
    %c0_4 = arith.constant 0 : index
    %c0_5 = arith.constant 0 : index
    %5 = vector.load %arg4[%c0_4, %c0_5] : memref<768x128xbf16, #tpu.memory_space<vmem>>, vector<768x128xbf16>
    %cst = arith.constant dense<0.000000e+00> : vector<16x128xf32>
    %6 = tpu.matmul %4, %5, %cst {dimension_numbers = #tpu.dot_dimension_numbers<[1], [0], [0], [1], [0, 0, 1, 1], [], []>} : vector<16x768xbf16>, vector<768x128xbf16>, vector<16x128xf32> -> vector<16x128xf32>
    %7 = arith.addf %3, %6 : vector<16x128xf32>
    %c0_6 = arith.constant 0 : index
    %c0_7 = arith.constant 0 : index
    %8 = vector.load %arg8[%c0_6, %c0_7] : memref<16x128xf32, #tpu.memory_space<vmem>>, vector<16x128xf32>
    tpu.vector_store %arg8[%c0_6, %c0_7], %7 {strides = array<i32>} : memref<16x128xf32, #tpu.memory_space<vmem>>, vector<16x128xf32>,
    %c0_i32_8 = arith.constant 0 : i32
    %9 = arith.cmpi eq, %arg1, %c0_i32_8 : i32
    %10 = arith.extui %9 : i1 to i32
    %c0_i32_9 = arith.constant 0 : i32
    %11 = arith.cmpi ne, %10, %c0_i32_9 : i32
    scf.if %11 {
      %c0_10 = arith.constant 0 : index
      %c0_11 = arith.constant 0 : index
      %12 = vector.load %arg8[%c0_10, %c0_11] : memref<16x128xf32, #tpu.memory_space<vmem>>, vector<16x128xf32>
      %13 = arith.mulf %12, %12 : vector<16x128xf32>
      %cst_12 = arith.constant dense<0.000000e+00> : vector<16xf32>
      %14 = vector.multi_reduction <add>, %13, %cst_12 [1] : vector<16x128xf32> to vector<16xf32>
      %15 = vector.shape_cast %14 : vector<16xf32> to vector<16x1xf32>
      %cst_13 = arith.constant 1.000000e-30 : f32
      %16 = vector.broadcast %cst_13 : f32 to vector<16x1xf32>
      %17 = arith.maximumf %15, %16 : vector<16x1xf32>
      %18 = math.rsqrt %17 : vector<16x1xf32>
      %19 = vector.broadcast %18 : vector<16x1xf32> to vector<16x128xf32>
      %20 = arith.mulf %12, %19 : vector<16x128xf32>
      %21 = arith.truncf %20 : vector<16x128xf32> to vector<16x128xbf16>
      %c0_14 = arith.constant 0 : index
      %c0_15 = arith.constant 0 : index
      %22 = vector.load %arg6[%c0_14, %c0_15] : memref<16x128xbf16, #tpu.memory_space<vmem>>, vector<16x128xbf16>
      tpu.vector_store %arg6[%c0_14, %c0_15], %21 {strides = array<i32>} : memref<16x128xbf16, #tpu.memory_space<vmem>>, vector<16x128xbf16>,
      %c0_16 = arith.constant 0 : index
      %c0_17 = arith.constant 0 : index
      %23 = vector.load %arg5[%c0_16, %c0_17] : memref<128x128xbf16, #tpu.memory_space<vmem>>, vector<128x128xbf16>
      %cst_18 = arith.constant dense<0.000000e+00> : vector<16x128xf32>
      %24 = tpu.matmul %21, %23, %cst_18 {dimension_numbers = #tpu.dot_dimension_numbers<[1], [0], [0], [1], [0, 0, 1, 1], [], []>} : vector<16x128xbf16>, vector<128x128xbf16>, vector<16x128xf32> -> vector<16x128xf32>
      %c0_19 = arith.constant 0 : index
      %25 = memref.load %arg2[%c0_19] : memref<1xf32, #tpu.memory_space<smem>>
      %26 = math.exp %25 : f32
      %27 = vector.broadcast %26 : f32 to vector<16x128xf32>
      %28 = arith.mulf %27, %24 : vector<16x128xf32>
      %c0_20 = arith.constant 0 : index
      %c0_21 = arith.constant 0 : index
      %29 = vector.load %arg7[%c0_20, %c0_21] : memref<16x128xf32, #tpu.memory_space<vmem>>, vector<16x128xf32>
      tpu.vector_store %arg7[%c0_20, %c0_21], %28 {strides = array<i32>} : memref<16x128xf32, #tpu.memory_space<vmem>>, vector<16x128xf32>,
    } else {
    }
    return
  }
  func.func @transform_0(%arg0: i32, %arg1: i32, %arg2: memref<1xf32, #tpu.memory_space<smem>>) -> (i32, i32) {
    %c0_i32 = arith.constant 0 : i32
    return %arg0, %arg1 : i32, i32
  }
  func.func @transform_1(%arg0: i32, %arg1: i32, %arg2: memref<1xf32, #tpu.memory_space<smem>>) -> (i32, i32) {
    %c0_i32 = arith.constant 0 : i32
    %c0_i32_0 = arith.constant 0 : i32
    return %arg1, %c0_i32 : i32, i32
  }
  func.func @transform_2(%arg0: i32, %arg1: i32, %arg2: memref<1xf32, #tpu.memory_space<smem>>) -> (i32, i32) {
    %c0_i32 = arith.constant 0 : i32
    %c0_i32_0 = arith.constant 0 : i32
    %c0_i32_1 = arith.constant 0 : i32
    return %c0_i32, %c0_i32_0 : i32, i32
  }
  func.func @transform_3(%arg0: i32, %arg1: i32, %arg2: memref<1xf32, #tpu.memory_space<smem>>) -> (i32, i32) {
    %c0_i32 = arith.constant 0 : i32
    %c0_i32_0 = arith.constant 0 : i32
    return %arg0, %c0_i32 : i32, i32
  }
  func.func @transform_4(%arg0: i32, %arg1: i32, %arg2: memref<1xf32, #tpu.memory_space<smem>>) -> (i32, i32) {
    %c0_i32 = arith.constant 0 : i32
    %c0_i32_0 = arith.constant 0 : i32
    return %arg0, %c0_i32 : i32, i32
  }
}

</mosaic_0001>

<bundles_post_ra>
// kernel: _forward.1
= control target key start
LH: loop header
LB: loop body
LE: loop exit
PB: predicated region body
PF: predicated region fallthrough
CT: control target
= control target key end

     0   :  { %12 = vsyncpa [#allocation6], 0  ;;  %s1044_s21 = smov [#allocation5]   ;;  %s1045_s23 = smov 64   ;;  %s1152_s0 = inlined_call_operand.<no memory space> [shape: f32[1], index: 0, kind: input, shape index: {}]   ;;  %s1153_s1 = inlined_call_operand.vmem [shape: bf16[16,768], index: 1, kind: input, shape index: {}]   ;;  %s1154_s2 = inlined_call_operand.hbm [shape: bf16[768,128], index: 2, kind: input, shape index: {}]   ;;  %s1155_s3 = inlined_call_operand.vmem [shape: bf16[128,128], index: 3, kind: input, shape index: {}]   ;;  %s1156_s4 = inlined_call_operand.vmem [shape: bf16[16,128], index: 4, kind: output, shape index: {0}]   ;;  %s1157_s5 = inlined_call_operand.vmem [shape: f32[16,128], index: 5, kind: output, shape index: {1}]  }
   0x1   :  { %s19_s20 = sshll.u32 %s1154_s2, 4  ;;  %s21_s22 = sshll.u32 %s1044_s21, 4  ;;  %s20_s20 = int_to_ptr.hbm [resolvable:$true] %s19_s20  ;;  %s22_s22 = int_to_ptr.vmem [resolvable:$true] %s21_s22 }
   0x2   :  { %s1046_s24 = smov 4  }
   0x3   :  { %27 = dma.hbm_to_vmem [thread:$0]  %s20_s20, 6144, %s22_s22, [#allocation6], %s1045_s23, %s1045_s23, %s1046_s24  }
   0x4   :  { %1042 = dma.done.wait [#allocation6], 6144  }
   0x5   :  { %1043 = vsyncadd [#allocation6], 4294961152  ;;  %v953_v0 = vld [vmem:[#allocation5 + $0x38] sm:$0xff]  ;;  %v952_v4 = vld [vmem:[#allocation5 + $0x30] sm:$0xff] }
   0x6   :  { %v961_v1 = vld [vmem:[#allocation5 + $0x78] sm:$0xff]  ;;  %462 = vmatpush.bf16.msra.mxu0 %v953_v0  ;;  %v960_v5 = vld [vmem:[#allocation5 + $0x70] sm:$0xff]  ;;  %v951_v8 = vld [vmem:[#allocation5 + $0x28] sm:$0xff] }
   0x7   :  { %v969_v2 = vld [vmem:[#allocation5 + $0xb8] sm:$0xff]  ;;  %476 = vmatpush.bf16.msra.mxu1 %v961_v1  ;;  %v968_v6 = vld [vmem:[#allocation5 + $0xb0] sm:$0xff]  ;;  %v959_v9 = vld [vmem:[#allocation5 + $0x68] sm:$0xff] }
   0x8   :  { %v977_v3 = vld [vmem:[#allocation5 + $0xf8] sm:$0xff]  ;;  %490 = vmatpush.bf16.msra.mxu2 %v969_v2  ;;  %v976_v7 = vld [vmem:[#allocation5 + $0xf0] sm:$0xff]  ;;  %v967_v10 = vld [vmem:[#allocation5 + $0xa8] sm:$0xff] }
   0x9   :  { %504 = vmatpush.bf16.msra.mxu3 %v977_v3  ;;  %v975_v11 = vld [vmem:[#allocation5 + $0xe8] sm:$0xff]  ;;  %v950_v12 = vld [vmem:[#allocation5 + $0x20] sm:$0xff]  ;;  %v949_v16 = vld [vmem:[#allocation5 + $0x18] sm:$0xff] }
   0xa   :  { %463 = vmatpush.bf16.msra.mxu0 %v952_v4  ;;  %v958_v13 = vld [vmem:[#allocation5 + $0x60] sm:$0xff]  ;;  %v957_v17 = vld [vmem:[#allocation5 + $0x58] sm:$0xff]  ;;  %v948_v20 = vld [vmem:[#allocation5 + $0x10] sm:$0xff] }
   0xb   :  { %477 = vmatpush.bf16.msra.mxu1 %v960_v5  ;;  %v966_v14 = vld [vmem:[#allocation5 + $0xa0] sm:$0xff]  ;;  %v965_v18 = vld [vmem:[#allocation5 + $0x98] sm:$0xff]  ;;  %v956_v21 = vld [vmem:[#allocation5 + $0x50] sm:$0xff] }
   0xc   :  { %491 = vmatpush.bf16.msra.mxu2 %v968_v6  ;;  %v974_v15 = vld [vmem:[#allocation5 + $0xe0] sm:$0xff]  ;;  %v973_v19 = vld [vmem:[#allocation5 + $0xd8] sm:$0xff]  ;;  %v964_v22 = vld [vmem:[#allocation5 + $0x90] sm:$0xff] }
   0xd   :  { %505 = vmatpush.bf16.msra.mxu3 %v976_v7  ;;  %v972_v23 = vld [vmem:[#allocation5 + $0xd0] sm:$0xff]  ;;  %v947_v24 = vld [vmem:[#allocation5 + $0x8] sm:$0xff]  ;;  %v946_v28 = vld [vmem:[#allocation5] sm:$0xff] }
   0xe   :  { %464 = vmatpush.bf16.msra.mxu0 %v951_v8  ;;  %v955_v25 = vld [vmem:[#allocation5 + $0x48] sm:$0xff]  ;;  %v954_v29 = vld [vmem:[#allocation5 + $0x40] sm:$0xff]  ;;  %v985_v31 = vld [vmem:[#allocation5 + $0x138] sm:$0xff] }
   0xf   :  { %478 = vmatpush.bf16.msra.mxu1 %v959_v9  ;;  %v963_v26 = vld [vmem:[#allocation5 + $0x88] sm:$0xff]  ;;  %v962_v30 = vld [vmem:[#allocation5 + $0x80] sm:$0xff]  ;;  %v943_v33 = vld [vmem:[%s1153_s1 + $0x14] sm:$0xf0] }
  0x10   :  { %492 = vmatpush.bf16.msra.mxu2 %v967_v10  ;;  %v971_v27 = vld [vmem:[#allocation5 + $0xc8] sm:$0xff]  ;;  %v694_v32 = vld [vmem:[%s1153_s1] sm:$0xf]  ;;  %v940_v34 = vld [vmem:[%s1153_s1 + $0x4] sm:$0xf] }
  0x11   :  { %506 = vmatpush.bf16.msra.mxu3 %v975_v11  ;;  %v696_v35 = vld [vmem:[%s1153_s1 + $0x18] sm:$0xf0]  ;;  %v702_v37 = vld [vmem:[%s1153_s1 + $0x8] sm:$0xf]  ;;  %v944_v38 = vld [vmem:[%s1153_s1 + $0x1c] sm:$0xf0]  ;;  %v695_v42 = vor.u32 %v943_v33, %v694_v32 }
  0x12   :  { %465 = vmatpush.bf16.msra.mxu0 %v950_v12  ;;  %v993_v36 = vld [vmem:[#allocation5 + $0x178] sm:$0xff]  ;;  %v970_v39 = vld [vmem:[#allocation5 + $0xc0] sm:$0xff]  ;;  %v941_v40 = vld [vmem:[%s1153_s1 + $0xc] sm:$0xf]  ;;  %v699_v43 = vor.u32 %v940_v34, %v696_v35  ;;  %v703_v44 = vor.u32 %v944_v38, %v702_v37 }
  0x13   :  { %479 = vmatpush.bf16.msra.mxu1 %v958_v13  ;;  %v704_v41 = vld [vmem:[%s1153_s1 + $0x20] sm:$0xf0]  ;;  %v984_v45 = vld [vmem:[#allocation5 + $0x130] sm:$0xff]  ;;  %v983_v48 = vld [vmem:[#allocation5 + $0x128] sm:$0xff] }
  0x14   :  { %493 = vmatpush.bf16.msra.mxu2 %v966_v14  ;;  %v707_v46 = vor.u32 %v941_v40, %v704_v41  ;;  %v992_v47 = vld [vmem:[#allocation5 + $0x170] sm:$0xff]  ;;  %v991_v49 = vld [vmem:[#allocation5 + $0x168] sm:$0xff]  ;;  %v982_v50 = vld [vmem:[#allocation5 + $0x120] sm:$0xff] }
  0x15   :  { %507 = vmatpush.bf16.msra.mxu3 %v974_v15  ;;  %v990_v51 = vld [vmem:[#allocation5 + $0x160] sm:$0xff]  ;;  %v981_v52 = vld [vmem:[#allocation5 + $0x118] sm:$0xff]  ;;  %v980_v54 = vld [vmem:[#allocation5 + $0x110] sm:$0xff] }
  0x16   :  { %466 = vmatpush.bf16.msra.mxu0 %v949_v16  ;;  %v989_v53 = vld [vmem:[#allocation5 + $0x158] sm:$0xff]  ;;  %v988_v55 = vld [vmem:[#allocation5 + $0x150] sm:$0xff]  ;;  %v979_v56 = vld [vmem:[#allocation5 + $0x108] sm:$0xff] }
  0x17   :  { %480 = vmatpush.bf16.msra.mxu1 %v957_v17  ;;  %v987_v57 = vld [vmem:[#allocation5 + $0x148] sm:$0xff]  ;;  %v978_v58 = vld [vmem:[#allocation5 + $0x100] sm:$0xff]  ;;  %v710_v59 = vld [vmem:[%s1153_s1 + $0x10] sm:$0xf] }
  0x18   :  { %494 = vmatpush.bf16.msra.mxu2 %v965_v18  ;;  %v945_v60 = vld [vmem:[%s1153_s1 + $0x24] sm:$0xf0]  ;;  %v986_v61 = vld [vmem:[#allocation5 + $0x140] sm:$0xff]  ;;  %v942_v62 = vld [vmem:[%s1153_s1 + $0x14] sm:$0xf] }
  0x19   :  { %508 = vmatpush.bf16.msra.mxu3 %v973_v19  ;;  %v712_v63 = vld [vmem:[%s1153_s1 + $0x28] sm:$0xf0]  ;;  %v711_v0 = vor.u32 %v945_v60, %v710_v59  ;;  %v994_v33 = vld [vmem:[%s1155_s3] sm:$0xff] }
  0x1a   :  { %467 = vmatpush.bf16.msra.mxu0 %v948_v20  ;;  %v715_v1 = vor.u32 %v942_v62, %v712_v63  ;;  %v995_v32 = vld [vmem:[%s1155_s3 + $0x8] sm:$0xff] }
  0x1b   :  { %481 = vmatpush.bf16.msra.mxu1 %v956_v21 }
  0x1c   :  { %495 = vmatpush.bf16.msra.mxu2 %v964_v22 }
  0x1d   :  { %509 = vmatpush.bf16.msra.mxu3 %v972_v23 }
  0x1e   :  { %468 = vmatpush.bf16.msra.mxu0 %v947_v24 }
  0x1f   :  { %482 = vmatpush.bf16.msra.mxu1 %v955_v25 }
  0x20   :  { %496 = vmatpush.bf16.msra.mxu2 %v963_v26  ;;  %v1001_v26 = vld [vmem:[%s1155_s3 + $0x38] sm:$0xff] }
  0x21   :  { %510 = vmatpush.bf16.msra.mxu3 %v971_v27  ;;  %v1000_v27 = vld [vmem:[%s1155_s3 + $0x30] sm:$0xff] }
  0x22   :  { %469 = vmatpush.bf16.msra.mxu0 %v946_v28  ;;  %v999_v28 = vld [vmem:[%s1155_s3 + $0x28] sm:$0xff] }
  0x23   :  { %483 = vmatpush.bf16.msra.mxu1 %v954_v29  ;;  %v998_v29 = vld [vmem:[%s1155_s3 + $0x20] sm:$0xff] }
  0x24   :  { %497 = vmatpush.bf16.msra.mxu2 %v962_v30  ;;  %v997_v30 = vld [vmem:[%s1155_s3 + $0x18] sm:$0xff] }
  0x25   :  { %511 = vmatpush.bf16.msra.mxu3 %v970_v39  ;;  %470 = vmatmul.bf16.vlgmr.msra.gmra.mxu0 %v695_v42 }
  0x26   :  { %518 = vmatpush.bf16.msrb.mxu0 %v985_v31  ;;  %484 = vmatmul.bf16.vlgmr.msra.gmra.mxu1 %v699_v43  ;;  %v996_v31 = vld [vmem:[%s1155_s3 + $0x10] sm:$0xff] }
  0x27   :  { %532 = vmatpush.bf16.msrb.mxu1 %v993_v36  ;;  %498 = vmatmul.bf16.vlgmr.msra.gmra.mxu2 %v703_v44  ;;  %v674_v36 = vstv %s1152_s0 }
  0x28   :  { %512 = vmatmul.bf16.vlgmr.msra.gmra.mxu3 %v707_v46  ;;  %659 = vmatpush.bf16.msrb.mxu2 %v1001_v26  ;;  %v675_v37 = vmul.f32 1.442695, %v674_v36 }
  0x2a   :  { %519 = vmatpush.bf16.msrb.mxu0 %v984_v45 }
  0x2b   :  { %533 = vmatpush.bf16.msrb.mxu1 %v992_v47 }
  0x2c   :  { %660 = vmatpush.bf16.msrb.mxu2 %v1000_v27 }
  0x2e   :  { %520 = vmatpush.bf16.msrb.mxu0 %v983_v48 }
  0x2f   :  { %534 = vmatpush.bf16.msrb.mxu1 %v991_v49 }
  0x30   :  { %661 = vmatpush.bf16.msrb.mxu2 %v999_v28 }
  0x32   :  { %521 = vmatpush.bf16.msrb.mxu0 %v982_v50 }
  0x33   :  { %535 = vmatpush.bf16.msrb.mxu1 %v990_v51 }
  0x34   :  { %662 = vmatpush.bf16.msrb.mxu2 %v998_v29 }
  0x36   :  { %522 = vmatpush.bf16.msrb.mxu0 %v981_v52 }
  0x37   :  { %536 = vmatpush.bf16.msrb.mxu1 %v989_v53 }
  0x38   :  { %663 = vmatpush.bf16.msrb.mxu2 %v997_v30 }
  0x3a   :  { %523 = vmatpush.bf16.msrb.mxu0 %v980_v54 }
  0x3b   :  { %537 = vmatpush.bf16.msrb.mxu1 %v988_v55 }
  0x3c   :  { %664 = vmatpush.bf16.msrb.mxu2 %v996_v31 }
  0x3e   :  { %524 = vmatpush.bf16.msrb.mxu0 %v979_v56 }
  0x3f   :  { %538 = vmatpush.bf16.msrb.mxu1 %v987_v57 }
  0x40   :  { %665 = vmatpush.bf16.msrb.mxu2 %v995_v32 }
  0x42   :  { %525 = vmatpush.bf16.msrb.mxu0 %v978_v58 }
  0x43   :  { %539 = vmatpush.bf16.msrb.mxu1 %v986_v61 }
  0x44   :  { %666 = vmatpush.bf16.msrb.mxu2 %v994_v33 }
  0x45   :  { %526 = vmatmul.bf16.vlgmr.msrb.gmra.mxu0 %v711_v0 }
  0x46   :  { %540 = vmatmul.bf16.vlgmr.msrb.gmra.mxu1 %v715_v1 }
  0xa2   :  { %v471_v2 = vpop.f32.mrf.mxu0 }
  0xa3   :  { %v485_v3 = vpop.f32.mrf.mxu1 }
  0xa4   :  { %v486_v5 = vadd.f32 %v485_v3, %v471_v2 }
  0xaa   :  { %v499_v4 = vpop.f32.mrf.mxu2  ;;  %v473_v6 = vpop.f32.mrf.mxu0 }
  0xab   :  { %v487_v7 = vpop.f32.mrf.mxu1  ;;  %v513_v8 = vpop.f32.mrf.mxu3  ;;  %v500_v9 = vadd.f32 %v499_v4, %v486_v5 }
  0xac   :  { %v488_v11 = vadd.f32 %v487_v7, %v473_v6 }
  0xad   :  { %v514_v10 = vadd.f32 %v513_v8, %v500_v9 }
  0xb2   :  { %v501_v12 = vpop.f32.mrf.mxu2 }
  0xb3   :  { %v502_v16 = vadd.f32 %v501_v12, %v488_v11  ;;  %v515_v18 = vpop.f32.mrf.mxu3 }
  0xb5   :  { %v516_v20 = vadd.f32 %v515_v18, %v502_v16 }
  0xc2   :  { %v527_v13 = vpop.f32.mrf.mxu0 }
  0xc3   :  { %v528_v14 = vadd.f32 %v527_v13, %v514_v10  ;;  %v541_v15 = vpop.f32.mrf.mxu1 }
  0xc5   :  { %v542_v17 = vadd.f32 %v541_v15, %v528_v14 }
  0xc7   :  { %v555_v19 = vmul.f32 %v542_v17, %v542_v17 }
  0xc9   :  { %557 = vadd.xlane.f32.xlu0 %v555_v19 }
  0xca   :  { %v529_v21 = vpop.f32.mrf.mxu0 }
  0xcb   :  { %v530_v22 = vadd.f32 %v529_v21, %v516_v20  ;;  %v543_v23 = vpop.f32.mrf.mxu1 }
  0xcd   :  { %v544_v24 = vadd.f32 %v543_v23, %v530_v22 }
  0xcf   :  { %v556_v25 = vmul.f32 %v544_v24, %v544_v24 }
  0xd1   :  { %559 = vadd.xlane.f32.xlu0 %v556_v25 }
 0x13c   :  { %v558_v34 = vpop.xlane.xlu0 %557 }
 0x13d   :  { %v561_v35 = vmax.f32 %v558_v34, 1e-30 }
 0x13f   :  { %1012 = vrsqrt.f32 %v561_v35  ;;  %vm569_vm1 = vweird.f32 %v561_v35 }
 0x140   :  { %1014 = vpow2.f32 %v675_v37 }
 0x144   :  { %v560_v38 = vpop.xlane.xlu0 %559 }
 0x145   :  { %v1013_v39 = vpop.eup %1012  ;;  %v562_v40 = vmax.f32 %v560_v38, 1e-30 }
 0x146   :  { %v564_v41 = vmul.f32 %v1013_v39, %v561_v35  ;;  %v1015_v43 = vpop.eup %1014  ;;  %vm570_vm0 = vweird.f32 %v1013_v39 }
 0x147   :  { %1016 = vrsqrt.f32 %v562_v40  ;;  %1007 = vpush %v1015_v43  ;;  %vm571_vm2 = vmor %vm569_vm1, %vm570_vm0  ;;  %vm579_vm4 = vweird.f32 %v562_v40 }
 0x148   :  { %v565_v42 = vmul.f32 %v1013_v39, %v564_v41 }
 0x14a   :  { %v566_v44 = vmul.f32 0.5, %v565_v42 }
 0x14c   :  { %v567_v45 = vsub.f32 1.5, %v566_v44 }
 0x14d   :  { %v1017_v46 = vpop.eup %1016 }
 0x14e   :  { %v568_v47 = vmul.f32 %v1013_v39, %v567_v45  ;;  %v574_v48 = vmul.f32 %v1017_v46, %v562_v40  ;;  %vm580_vm3 = vweird.f32 %v1017_v46 }
 0x14f   :  { %vm581_vm5 = vmor %vm579_vm4, %vm580_vm3 }
 0x150   :  { %v575_v49 = vmul.f32 %v1017_v46, %v574_v48  ;;  %v572_v50 = vsel %vm571_vm2, %v1013_v39, %v568_v47 }
 0x151   :  { %v583_v53 = vmul.f32 %v572_v50, %v542_v17 }
 0x152   :  { %v576_v51 = vmul.f32 0.5, %v575_v49 }
 0x153   :  { %v585_v57 = vpack.c.bf16 %v583_v53, %v583_v53 }
 0x154   :  { %v577_v52 = vsub.f32 1.5, %v576_v51 }
 0x155   :  { %v607_v60 = vunpack.c.l.b16 %v585_v57 }
 0x156   :  { %v578_v54 = vmul.f32 %v1017_v46, %v577_v52 }
 0x158   :  { %v582_v55 = vsel %vm581_vm5, %v1017_v46, %v578_v54 }
 0x159   :  { %v584_v56 = vmul.f32 %v582_v55, %v544_v24 }
 0x15b   :  { %v586_v58 = vpack.c.bf16 %v584_v56, %v584_v56  ;;  %v1005_v59 = vpack.c.bf16 %v584_v56, %v583_v53 }
 0x15d   :  { %1006 = vst [vmem:[%s1156_s4] sm:$0xff] %v1005_v59   ;;  %v608_v61 = vunpack.c.l.b16 %v586_v58 }
 0x15f   :  { %v609_v62 = vpack.c.b16 %v608_v61, %v607_v60 }
 0x161   :  { %667 = vmatmul.bf16.vlgmr.msrb.gmra.mxu2 %v609_v62 }
 0x178   :  { %s1008_s14 = spop %1007 }
 0x179   :  { %v678_v63 = vstv %s1008_s14 }
 0x1e4   :  { %v668_v0 = vpop.f32.mrf.mxu2 }
 0x1e5   :  { %v679_v1 = vmul.f32 %v678_v63, %v668_v0 }
 0x1e7   :  { %681 = vst [vmem:[%s1157_s5] sm:$0xff] %v679_v1 }
 0x1ec   :  { %v670_v2 = vpop.f32.mrf.mxu2 }
 0x1ed   :  { %v680_v3 = vmul.f32 %v678_v63, %v670_v2 }
 0x1ef   :  { %682 = vst [vmem:[%s1157_s5 + $0x8] sm:$0xff] %v680_v3 }
 0x1f0   :  { %691 = vsyncpa [#allocation6], 1 }

// kernel: _forward.1
= control target key start
LH: loop header
LB: loop body
LE: loop exit
PB: predicated region body
PF: predicated region fallthrough
CT: control target
= control target key end

     0   :  { %12 = vsyncpa [#allocation6], 0  ;;  %s1044_s21 = smov [#allocation5]   ;;  %s1045_s23 = smov 64   ;;  %s1152_s0 = inlined_call_operand.<no memory space> [shape: f32[1], index: 0, kind: input, shape index: {}]   ;;  %s1153_s1 = inlined_call_operand.vmem [shape: bf16[16,768], index: 1, kind: input, shape index: {}]   ;;  %s1154_s2 = inlined_call_operand.hbm [shape: bf16[768,128], index: 2, kind: input, shape index: {}]   ;;  %s1155_s3 = inlined_call_operand.vmem [shape: bf16[128,128], index: 3, kind: input, shape index: {}]   ;;  %s1156_s4 = inlined_call_operand.vmem [shape: bf16[16,128], index: 4, kind: output, shape index: {0}]   ;;  %s1157_s5 = inlined_call_operand.vmem [shape: f32[16,128], index: 5, kind: output, shape index: {1}]  }
   0x1   :  { %s19_s20 = sshll.u32 %s1154_s2, 4  ;;  %s21_s22 = sshll.u32 %s1044_s21, 4  ;;  %s20_s20 = int_to_ptr.hbm [resolvable:$true] %s19_s20  ;;  %s22_s22 = int_to_ptr.vmem [resolvable:$true] %s21_s22 }
   0x2   :  { %s1046_s24 = smov 4  }
   0x3   :  { %27 = dma.hbm_to_vmem [thread:$0]  %s20_s20, 6144, %s22_s22, [#allocation6], %s1045_s23, %s1045_s23, %s1046_s24  }
   0x4   :  { %1042 = dma.done.wait [#allocation6], 6144  }
   0x5   :  { %1043 = vsyncadd [#allocation6], 4294961152  ;;  %v953_v0 = vld [vmem:[#allocation5 + $0x38] sm:$0xff]  ;;  %v952_v4 = vld [vmem:[#allocation5 + $0x30] sm:$0xff] }
   0x6   :  { %v961_v1 = vld [vmem:[#allocation5 + $0x78] sm:$0xff]  ;;  %462 = vmatpush.bf16.msra.mxu0 %v953_v0  ;;  %v960_v5 = vld [vmem:[#allocation5 + $0x70] sm:$0xff]  ;;  %v951_v8 = vld [vmem:[#allocation5 + $0x28] sm:$0xff] }
   0x7   :  { %v969_v2 = vld [vmem:[#allocation5 + $0xb8] sm:$0xff]  ;;  %476 = vmatpush.bf16.msra.mxu1 %v961_v1  ;;  %v968_v6 = vld [vmem:[#allocation5 + $0xb0] sm:$0xff]  ;;  %v959_v9 = vld [vmem:[#allocation5 + $0x68] sm:$0xff] }
   0x8   :  { %v977_v3 = vld [vmem:[#allocation5 + $0xf8] sm:$0xff]  ;;  %490 = vmatpush.bf16.msra.mxu2 %v969_v2  ;;  %v976_v7 = vld [vmem:[#allocation5 + $0xf0] sm:$0xff]  ;;  %v967_v10 = vld [vmem:[#allocation5 + $0xa8] sm:$0xff] }
   0x9   :  { %504 = vmatpush.bf16.msra.mxu3 %v977_v3  ;;  %v975_v11 = vld [vmem:[#allocation5 + $0xe8] sm:$0xff]  ;;  %v950_v12 = vld [vmem:[#allocation5 + $0x20] sm:$0xff]  ;;  %v949_v16 = vld [vmem:[#allocation5 + $0x18] sm:$0xff] }
   0xa   :  { %463 = vmatpush.bf16.msra.mxu0 %v952_v4  ;;  %v958_v13 = vld [vmem:[#allocation5 + $0x60] sm:$0xff]  ;;  %v957_v17 = vld [vmem:[#allocation5 + $0x58] sm:$0xff]  ;;  %v948_v20 = vld [vmem:[#allocation5 + $0x10] sm:$0xff] }
   0xb   :  { %477 = vmatpush.bf16.msra.mxu1 %v960_v5  ;;  %v966_v14 = vld [vmem:[#allocation5 + $0xa0] sm:$0xff]  ;;  %v965_v18 = vld [vmem:[#allocation5 + $0x98] sm:$0xff]  ;;  %v956_v21 = vld [vmem:[#allocation5 + $0x50] sm:$0xff] }
   0xc   :  { %491 = vmatpush.bf16.msra.mxu2 %v968_v6  ;;  %v974_v15 = vld [vmem:[#allocation5 + $0xe0] sm:$0xff]  ;;  %v973_v19 = vld [vmem:[#allocation5 + $0xd8] sm:$0xff]  ;;  %v964_v22 = vld [vmem:[#allocation5 + $0x90] sm:$0xff] }
   0xd   :  { %505 = vmatpush.bf16.msra.mxu3 %v976_v7  ;;  %v972_v23 = vld [vmem:[#allocation5 + $0xd0] sm:$0xff]  ;;  %v947_v24 = vld [vmem:[#allocation5 + $0x8] sm:$0xff]  ;;  %v946_v28 = vld [vmem:[#allocation5] sm:$0xff] }
   0xe   :  { %464 = vmatpush.bf16.msra.mxu0 %v951_v8  ;;  %v955_v25 = vld [vmem:[#allocation5 + $0x48] sm:$0xff]  ;;  %v954_v29 = vld [vmem:[#allocation5 + $0x40] sm:$0xff]  ;;  %v985_v31 = vld [vmem:[#allocation5 + $0x138] sm:$0xff] }
   0xf   :  { %478 = vmatpush.bf16.msra.mxu1 %v959_v9  ;;  %v963_v26 = vld [vmem:[#allocation5 + $0x88] sm:$0xff]  ;;  %v962_v30 = vld [vmem:[#allocation5 + $0x80] sm:$0xff]  ;;  %v943_v33 = vld [vmem:[%s1153_s1 + $0x14] sm:$0xf0] }
  0x10   :  { %492 = vmatpush.bf16.msra.mxu2 %v967_v10  ;;  %v971_v27 = vld [vmem:[#allocation5 + $0xc8] sm:$0xff]  ;;  %v694_v32 = vld [vmem:[%s1153_s1] sm:$0xf]  ;;  %v940_v34 = vld [vmem:[%s1153_s1 + $0x4] sm:$0xf] }
  0x11   :  { %506 = vmatpush.bf16.msra.mxu3 %v975_v11  ;;  %v696_v35 = vld [vmem:[%s1153_s1 + $0x18] sm:$0xf0]  ;;  %v702_v37 = vld [vmem:[%s1153_s1 + $0x8] sm:$0xf]  ;;  %v944_v38 = vld [vmem:[%s1153_s1 + $0x1c] sm:$0xf0]  ;;  %v695_v42 = vor.u32 %v943_v33, %v694_v32 }
  0x12   :  { %465 = vmatpush.bf16.msra.mxu0 %v950_v12  ;;  %v993_v36 = vld [vmem:[#allocation5 + $0x178] sm:$0xff]  ;;  %v970_v39 = vld [vmem:[#allocation5 + $0xc0] sm:$0xff]  ;;  %v941_v40 = vld [vmem:[%s1153_s1 + $0xc] sm:$0xf]  ;;  %v699_v43 = vor.u32 %v940_v34, %v696_v35  ;;  %v703_v44 = vor.u32 %v944_v38, %v702_v37 }
  0x13   :  { %479 = vmatpush.bf16.msra.mxu1 %v958_v13  ;;  %v704_v41 = vld [vmem:[%s1153_s1 + $0x20] sm:$0xf0]  ;;  %v984_v45 = vld [vmem:[#allocation5 + $0x130] sm:$0xff]  ;;  %v983_v48 = vld [vmem:[#allocation5 + $0x128] sm:$0xff] }
  0x14   :  { %493 = vmatpush.bf16.msra.mxu2 %v966_v14  ;;  %v707_v46 = vor.u32 %v941_v40, %v704_v41  ;;  %v992_v47 = vld [vmem:[#allocation5 + $0x170] sm:$0xff]  ;;  %v991_v49 = vld [vmem:[#allocation5 + $0x168] sm:$0xff]  ;;  %v982_v50 = vld [vmem:[#allocation5 + $0x120] sm:$0xff] }
  0x15   :  { %507 = vmatpush.bf16.msra.mxu3 %v974_v15  ;;  %v990_v51 = vld [vmem:[#allocation5 + $0x160] sm:$0xff]  ;;  %v981_v52 = vld [vmem:[#allocation5 + $0x118] sm:$0xff]  ;;  %v980_v54 = vld [vmem:[#allocation5 + $0x110] sm:$0xff] }
  0x16   :  { %466 = vmatpush.bf16.msra.mxu0 %v949_v16  ;;  %v989_v53 = vld [vmem:[#allocation5 + $0x158] sm:$0xff]  ;;  %v988_v55 = vld [vmem:[#allocation5 + $0x150] sm:$0xff]  ;;  %v979_v56 = vld [vmem:[#allocation5 + $0x108] sm:$0xff] }
  0x17   :  { %480 = vmatpush.bf16.msra.mxu1 %v957_v17  ;;  %v987_v57 = vld [vmem:[#allocation5 + $0x148] sm:$0xff]  ;;  %v978_v58 = vld [vmem:[#allocation5 + $0x100] sm:$0xff]  ;;  %v710_v59 = vld [vmem:[%s1153_s1 + $0x10] sm:$0xf] }
  0x18   :  { %494 = vmatpush.bf16.msra.mxu2 %v965_v18  ;;  %v945_v60 = vld [vmem:[%s1153_s1 + $0x24] sm:$0xf0]  ;;  %v986_v61 = vld [vmem:[#allocation5 + $0x140] sm:$0xff]  ;;  %v942_v62 = vld [vmem:[%s1153_s1 + $0x14] sm:$0xf] }
  0x19   :  { %508 = vmatpush.bf16.msra.mxu3 %v973_v19  ;;  %v712_v63 = vld [vmem:[%s1153_s1 + $0x28] sm:$0xf0]  ;;  %v711_v0 = vor.u32 %v945_v60, %v710_v59  ;;  %v994_v33 = vld [vmem:[%s1155_s3] sm:$0xff] }
  0x1a   :  { %467 = vmatpush.bf16.msra.mxu0 %v948_v20  ;;  %v715_v1 = vor.u32 %v942_v62, %v712_v63  ;;  %v995_v32 = vld [vmem:[%s1155_s3 + $0x8] sm:$0xff] }
  0x1b   :  { %481 = vmatpush.bf16.msra.mxu1 %v956_v21 }
  0x1c   :  { %495 = vmatpush.bf16.msra.mxu2 %v964_v22 }
  0x1d   :  { %509 = vmatpush.bf16.msra.mxu3 %v972_v23 }
  0x1e   :  { %468 = vmatpush.bf16.msra.mxu0 %v947_v24 }
  0x1f   :  { %482 = vmatpush.bf16.msra.mxu1 %v955_v25 }
  0x20   :  { %496 = vmatpush.bf16.msra.mxu2 %v963_v26  ;;  %v1001_v26 = vld [vmem:[%s1155_s3 + $0x38] sm:$0xff] }
  0x21   :  { %510 = vmatpush.bf16.msra.mxu3 %v971_v27  ;;  %v1000_v27 = vld [vmem:[%s1155_s3 + $0x30] sm:$0xff] }
  0x22   :  { %469 = vmatpush.bf16.msra.mxu0 %v946_v28  ;;  %v999_v28 = vld [vmem:[%s1155_s3 + $0x28] sm:$0xff] }
  0x23   :  { %483 = vmatpush.bf16.msra.mxu1 %v954_v29  ;;  %v998_v29 = vld [vmem:[%s1155_s3 + $0x20] sm:$0xff] }
  0x24   :  { %497 = vmatpush.bf16.msra.mxu2 %v962_v30  ;;  %v997_v30 = vld [vmem:[%s1155_s3 + $0x18] sm:$0xff] }
  0x25   :  { %511 = vmatpush.bf16.msra.mxu3 %v970_v39  ;;  %470 = vmatmul.bf16.vlgmr.msra.gmra.mxu0 %v695_v42 }
  0x26   :  { %518 = vmatpush.bf16.msrb.mxu0 %v985_v31  ;;  %484 = vmatmul.bf16.vlgmr.msra.gmra.mxu1 %v699_v43  ;;  %v996_v31 = vld [vmem:[%s1155_s3 + $0x10] sm:$0xff] }
  0x27   :  { %532 = vmatpush.bf16.msrb.mxu1 %v993_v36  ;;  %498 = vmatmul.bf16.vlgmr.msra.gmra.mxu2 %v703_v44  ;;  %v674_v36 = vstv %s1152_s0 }
  0x28   :  { %512 = vmatmul.bf16.vlgmr.msra.gmra.mxu3 %v707_v46  ;;  %659 = vmatpush.bf16.msrb.mxu2 %v1001_v26  ;;  %v675_v37 = vmul.f32 1.442695, %v674_v36 }
  0x2a   :  { %519 = vmatpush.bf16.msrb.mxu0 %v984_v45 }
  0x2b   :  { %533 = vmatpush.bf16.msrb.mxu1 %v992_v47 }
  0x2c   :  { %660 = vmatpush.bf16.msrb.mxu2 %v1000_v27 }
  0x2e   :  { %520 = vmatpush.bf16.msrb.mxu0 %v983_v48 }
  0x2f   :  { %534 = vmatpush.bf16.msrb.mxu1 %v991_v49 }
  0x30   :  { %661 = vmatpush.bf16.msrb.mxu2 %v999_v28 }
  0x32   :  { %521 = vmatpush.bf16.msrb.mxu0 %v982_v50 }
  0x33   :  { %535 = vmatpush.bf16.msrb.mxu1 %v990_v51 }
  0x34   :  { %662 = vmatpush.bf16.msrb.mxu2 %v998_v29 }
  0x36   :  { %522 = vmatpush.bf16.msrb.mxu0 %v981_v52 }
  0x37   :  { %536 = vmatpush.bf16.msrb.mxu1 %v989_v53 }
  0x38   :  { %663 = vmatpush.bf16.msrb.mxu2 %v997_v30 }
  0x3a   :  { %523 = vmatpush.bf16.msrb.mxu0 %v980_v54 }
  0x3b   :  { %537 = vmatpush.bf16.msrb.mxu1 %v988_v55 }
  0x3c   :  { %664 = vmatpush.bf16.msrb.mxu2 %v996_v31 }
  0x3e   :  { %524 = vmatpush.bf16.msrb.mxu0 %v979_v56 }
  0x3f   :  { %538 = vmatpush.bf16.msrb.mxu1 %v987_v57 }
  0x40   :  { %665 = vmatpush.bf16.msrb.mxu2 %v995_v32 }
  0x42   :  { %525 = vmatpush.bf16.msrb.mxu0 %v978_v58 }
  0x43   :  { %539 = vmatpush.bf16.msrb.mxu1 %v986_v61 }
  0x44   :  { %666 = vmatpush.bf16.msrb.mxu2 %v994_v33 }
  0x45   :  { %526 = vmatmul.bf16.vlgmr.msrb.gmra.mxu0 %v711_v0 }
  0x46   :  { %540 = vmatmul.bf16.vlgmr.msrb.gmra.mxu1 %v715_v1 }
  0xa2   :  { %v471_v2 = vpop.f32.mrf.mxu0 }
  0xa3   :  { %v485_v3 = vpop.f32.mrf.mxu1 }
  0xa4   :  { %v486_v5 = vadd.f32 %v485_v3, %v471_v2 }
  0xaa   :  { %v499_v4 = vpop.f32.mrf.mxu2  ;;  %v473_v6 = vpop.f32.mrf.mxu0 }
  0xab   :  { %v487_v7 = vpop.f32.mrf.mxu1  ;;  %v513_v8 = vpop.f32.mrf.mxu3  ;;  %v500_v9 = vadd.f32 %v499_v4, %v486_v5 }
  0xac   :  { %v488_v11 = vadd.f32 %v487_v7, %v473_v6 }
  0xad   :  { %v514_v10 = vadd.f32 %v513_v8, %v500_v9 }
  0xb2   :  { %v501_v12 = vpop.f32.mrf.mxu2 }
  0xb3   :  { %v502_v16 = vadd.f32 %v501_v12, %v488_v11  ;;  %v515_v18 = vpop.f32.mrf.mxu3 }
  0xb5   :  { %v516_v20 = vadd.f32 %v515_v18, %v502_v16 }
  0xc2   :  { %v527_v13 = vpop.f32.mrf.mxu0 }
  0xc3   :  { %v528_v14 = vadd.f32 %v527_v13, %v514_v10  ;;  %v541_v15 = vpop.f32.mrf.mxu1 }
  0xc5   :  { %v542_v17 = vadd.f32 %v541_v15, %v528_v14 }
  0xc7   :  { %v555_v19 = vmul.f32 %v542_v17, %v542_v17 }
  0xc9   :  { %557 = vadd.xlane.f32.xlu0 %v555_v19 }
  0xca   :  { %v529_v21 = vpop.f32.mrf.mxu0 }
  0xcb   :  { %v530_v22 = vadd.f32 %v529_v21, %v516_v20  ;;  %v543_v23 = vpop.f32.mrf.mxu1 }
  0xcd   :  { %v544_v24 = vadd.f32 %v543_v23, %v530_v22 }
  0xcf   :  { %v556_v25 = vmul.f32 %v544_v24, %v544_v24 }
  0xd1   :  { %559 = vadd.xlane.f32.xlu0 %v556_v25 }
 0x13c   :  { %v558_v34 = vpop.xlane.xlu0 %557 }
 0x13d   :  { %v561_v35 = vmax.f32 %v558_v34, 1e-30 }
 0x13f   :  { %1012 = vrsqrt.f32 %v561_v35  ;;  %vm569_vm1 = vweird.f32 %v561_v35 }
 0x140   :  { %1014 = vpow2.f32 %v675_v37 }
 0x144   :  { %v560_v38 = vpop.xlane.xlu0 %559 }
 0x145   :  { %v1013_v39 = vpop.eup %1012  ;;  %v562_v40 = vmax.f32 %v560_v38, 1e-30 }
 0x146   :  { %v564_v41 = vmul.f32 %v1013_v39, %v561_v35  ;;  %v1015_v43 = vpop.eup %1014  ;;  %vm570_vm0 = vweird.f32 %v1013_v39 }
 0x147   :  { %1016 = vrsqrt.f32 %v562_v40  ;;  %1007 = vpush %v1015_v43  ;;  %vm571_vm2 = vmor %vm569_vm1, %vm570_vm0  ;;  %vm579_vm4 = vweird.f32 %v562_v40 }
 0x148   :  { %v565_v42 = vmul.f32 %v1013_v39, %v564_v41 }
 0x14a   :  { %v566_v44 = vmul.f32 0.5, %v565_v42 }
 0x14c   :  { %v567_v45 = vsub.f32 1.5, %v566_v44 }
 0x14d   :  { %v1017_v46 = vpop.eup %1016 }
 0x14e   :  { %v568_v47 = vmul.f32 %v1013_v39, %v567_v45  ;;  %v574_v48 = vmul.f32 %v1017_v46, %v562_v40  ;;  %vm580_vm3 = vweird.f32 %v1017_v46 }
 0x14f   :  { %vm581_vm5 = vmor %vm579_vm4, %vm580_vm3 }
 0x150   :  { %v575_v49 = vmul.f32 %v1017_v46, %v574_v48  ;;  %v572_v50 = vsel %vm571_vm2, %v1013_v39, %v568_v47 }
 0x151   :  { %v583_v53 = vmul.f32 %v572_v50, %v542_v17 }
 0x152   :  { %v576_v51 = vmul.f32 0.5, %v575_v49 }
 0x153   :  { %v585_v57 = vpack.c.bf16 %v583_v53, %v583_v53 }
 0x154   :  { %v577_v52 = vsub.f32 1.5, %v576_v51 }
 0x155   :  { %v607_v60 = vunpack.c.l.b16 %v585_v57 }
 0x156   :  { %v578_v54 = vmul.f32 %v1017_v46, %v577_v52 }
 0x158   :  { %v582_v55 = vsel %vm581_vm5, %v1017_v46, %v578_v54 }
 0x159   :  { %v584_v56 = vmul.f32 %v582_v55, %v544_v24 }
 0x15b   :  { %v586_v58 = vpack.c.bf16 %v584_v56, %v584_v56  ;;  %v1005_v59 = vpack.c.bf16 %v584_v56, %v583_v53 }
 0x15d   :  { %1006 = vst [vmem:[%s1156_s4] sm:$0xff] %v1005_v59   ;;  %v608_v61 = vunpack.c.l.b16 %v586_v58 }
 0x15f   :  { %v609_v62 = vpack.c.b16 %v608_v61, %v607_v60 }
 0x161   :  { %667 = vmatmul.bf16.vlgmr.msrb.gmra.mxu2 %v609_v62 }
 0x178   :  { %s1008_s14 = spop %1007 }
 0x179   :  { %v678_v63 = vstv %s1008_s14 }
 0x1e4   :  { %v668_v0 = vpop.f32.mrf.mxu2 }
 0x1e5   :  { %v679_v1 = vmul.f32 %v678_v63, %v668_v0 }
 0x1e7   :  { %681 = vst [vmem:[%s1157_s5] sm:$0xff] %v679_v1 }
 0x1ec   :  { %v670_v2 = vpop.f32.mrf.mxu2 }
 0x1ed   :  { %v680_v3 = vmul.f32 %v678_v63, %v670_v2 }
 0x1ef   :  { %682 = vst [vmem:[%s1157_s5 + $0x8] sm:$0xff] %v680_v3 }
 0x1f0   :  { %691 = vsyncpa [#allocation6], 1 }

</bundles_post_ra>
